<compile_context>
chip_gen: v7x
topology: tpu7x:2x2x1
jax: 0.10.0
libtpu: 0.0.40
codegen_flags: <defaults>
</compile_context>

<pallas_src>
import jax
import jax.numpy as jnp
from jax import lax
from jax.experimental import pallas as pl
from jax.experimental.pallas import tpu as pltpu

INPUT_SIZE = 320
HIDDEN = [128, 64, 32, 16]
OUT_SIZE = 1


def _round_up(x, m):
    return ((x + m - 1) // m) * m


def _make_kernel(compute_dtype):
    def mlp_kernel(x_ref,
                   w1_ref, b1_ref,
                   w2_ref, b2_ref,
                   w3_ref, b3_ref,
                   w4_ref, b4_ref,
                   w5_ref, b5_ref,
                   o_ref):
        # Whole MLP fused on one batch tile.
        # astype is a no-op when x is already compute_dtype (f32 exact path).
        h = x_ref[...].astype(compute_dtype)

        # Four (Linear + ReLU) hidden layers on the MXU, f32 accumulate,
        # bias-add + ReLU in f32, re-narrow to compute_dtype for the next dot.
        for w_ref, b_ref in ((w1_ref, b1_ref), (w2_ref, b2_ref),
                             (w3_ref, b3_ref), (w4_ref, b4_ref)):
            acc = jnp.dot(h, w_ref[...], preferred_element_type=jnp.float32)
            h = jnp.maximum(acc + b_ref[...], 0.0).astype(compute_dtype)

        # Final 16 -> 1 layer, computed as (8,16) @ (tile,16)^T (rhs contracts on its
        # minor dim, same pattern as q @ k.T).  Row 0 of w5_ref holds the real weight
        # vector, rows 1..7 are zero padding.  Result is a lane-dense (1, tile) row:
        # batch on the lane axis -> unmasked vector stores.
        res = lax.dot_general(
            w5_ref[...], h,
            dimension_numbers=(((1,), (1,)), ((), ())),
            preferred_element_type=jnp.float32)              # (8, tile) f32
        out = res[0:1, :] + b5_ref[...]                       # (1, tile) f32
        o_ref[...] = jnp.reshape(out, o_ref.shape).astype(o_ref.dtype)

    return mlp_kernel


def feedforward_nn(x, params, *, batch_tile=2048, compute_dtype=jnp.bfloat16):
    """Fused MLP forward.

    x:      [B, 320] float32 (or bfloat16).
    params: list of 5 (W [in, out], b [1, out]) pairs for 320->128->64->32->16->1.
    """
    B, F = x.shape
    assert F == INPUT_SIZE
    assert len(params) == 5
    compute_dtype = jnp.dtype(compute_dtype)

    # ---- batch tiling: no wrapper-side padding; grid = cdiv(B, tile) and the
    # boundary block's out-of-bounds rows produce garbage that is sliced off below.
    batch_tile = _round_up(max(batch_tile, 8), 8)
    tile = min(batch_tile, _round_up(B, 8))
    # Keep >= 2 grid steps when the batch is big enough so the "parallel" grid axis
    # can be sharded across v7x's two TensorCores.
    if B > 256 and pl.cdiv(B, tile) < 2:
        tile = _round_up(pl.cdiv(B, 2), 8)
    grid = pl.cdiv(B, tile)

    # ---- pack weights (tiny: ~52K params, cast is negligible; ideally callers
    #      store params in compute_dtype already) ----
    flat_args = []
    w_specs = []
    for W, b in params[:4]:
        flat_args += [W.astype(compute_dtype), b.astype(jnp.float32)]
        w_specs.append(pl.BlockSpec(W.shape, lambda i: (0, 0)))
        w_specs.append(pl.BlockSpec(b.shape, lambda i: (0, 0)))
    W5, b5 = params[4]
    w5p = jnp.zeros((8, HIDDEN[-1]), compute_dtype).at[0, :].set(
        W5[:, 0].astype(compute_dtype))
    b5 = b5.reshape(1, 1).astype(jnp.float32)
    flat_args += [w5p, b5]
    w_specs.append(pl.BlockSpec((8, HIDDEN[-1]), lambda i: (0, 0)))
    w_specs.append(pl.BlockSpec((1, 1), lambda i: (0, 0)))

    out3 = pl.pallas_call(
        _make_kernel(compute_dtype),
        out_shape=jax.ShapeDtypeStruct((grid, 1, tile), x.dtype),
        grid_spec=pltpu.PrefetchScalarGridSpec(
            num_scalar_prefetch=0,
            grid=(grid,),
            in_specs=[pl.BlockSpec((tile, F), lambda i: (i, 0))] + w_specs,
            out_specs=pl.BlockSpec((1, 1, tile), lambda i: (i, 0, 0)),
        ),
        compiler_params=pltpu.CompilerParams(
            dimension_semantics=("parallel",)),
    )(x, *flat_args)

    # Lane-dense (grid, 1, tile) -> (B, 1); rows >= B (boundary-block garbage) dropped.
    return out3.reshape(-1)[:B].reshape(B, OUT_SIZE)


def init_params(key):
    """Deterministic init matching nn.Linear shapes (uniform +/- 1/sqrt(fan_in))."""
    sizes = [INPUT_SIZE] + HIDDEN + [OUT_SIZE]
    params = []
    for i in range(len(sizes) - 1):
        fan_in, fan_out = sizes[i], sizes[i + 1]
        key, kw, kb = jax.random.split(key, 3)
        bound = 1.0 / jnp.sqrt(fan_in)
        W = jax.random.uniform(kw, (fan_in, fan_out), jnp.float32, -bound, bound)
        b = jax.random.uniform(kb, (1, fan_out), jnp.float32, -bound, bound)
        params.append((W, b))
    return params


def reference(x, params):
    h = x
    for i, (W, b) in enumerate(params):
        h = jnp.dot(h, W, precision="highest") + b
        if i < len(params) - 1:
            h = jnp.maximum(h, 0.0)
    return h


if __name__ == "__main__":
    key = jax.random.PRNGKey(0)
    kx, kp = jax.random.split(key)

    B = 300  # ragged batch: exercises the no-pad boundary block + multi-step grid
    x = jax.random.normal(kx, (B, INPUT_SIZE), jnp.float32)
    params = init_params(kp)

    ref = reference(x, params)

    # Exact f32 path, small tile -> grid of 3 (tests ragged tiling + lane-dense out).
    out_f32 = jax.block_until_ready(
        feedforward_nn(x, params, batch_tile=128, compute_dtype=jnp.float32))
    assert out_f32.shape == (B, OUT_SIZE)
    assert jnp.allclose(out_f32, ref, atol=1e-3, rtol=1e-3), (
        float(jnp.max(jnp.abs(out_f32 - ref))))

    # Default fast path: bf16 MXU streaming, adaptive tile (grid of 2 here).
    out_bf16 = jax.block_until_ready(feedforward_nn(x, params))
    assert out_bf16.shape == (B, OUT_SIZE)
    assert jnp.allclose(out_bf16, ref, atol=5e-2, rtol=5e-2), (
        float(jnp.max(jnp.abs(out_bf16 - ref))))

    print("KERNEL_OK")
</pallas_src>

<mosaic_0001>
module attributes {stable_mosaic.version = 11 : i64} {
  func.func @mlp_kernel(%arg0: i32, %arg1: memref<128x320xf32, #tpu.memory_space<vmem>>, %arg2: memref<320x128xf32, #tpu.memory_space<vmem>>, %arg3: memref<1x128xf32, #tpu.memory_space<vmem>>, %arg4: memref<128x64xf32, #tpu.memory_space<vmem>>, %arg5: memref<1x64xf32, #tpu.memory_space<vmem>>, %arg6: memref<64x32xf32, #tpu.memory_space<vmem>>, %arg7: memref<1x32xf32, #tpu.memory_space<vmem>>, %arg8: memref<32x16xf32, #tpu.memory_space<vmem>>, %arg9: memref<1x16xf32, #tpu.memory_space<vmem>>, %arg10: memref<8x16xf32, #tpu.memory_space<vmem>>, %arg11: memref<1x1xf32, #tpu.memory_space<vmem>>, %arg12: memref<1x1x128xf32, #tpu.memory_space<vmem>>) attributes {dimension_semantics = [#tpu.dimension_semantics<parallel>], iteration_bounds = array<i64: 3>, scalar_prefetch = 0 : i64, scratch_operands = 0 : i64, tpu.core_type = #tpu.core_type<tc>, window_params = [{transform_indices = @transform_0, window_bounds = array<i64: 128, 320>}, {pipeline_mode = #tpu.pipeline_mode<synchronous>, transform_indices = @transform_1, window_bounds = array<i64: 320, 128>}, {pipeline_mode = #tpu.pipeline_mode<synchronous>, transform_indices = @transform_2, window_bounds = array<i64: 1, 128>}, {pipeline_mode = #tpu.pipeline_mode<synchronous>, transform_indices = @transform_3, window_bounds = array<i64: 128, 64>}, {pipeline_mode = #tpu.pipeline_mode<synchronous>, transform_indices = @transform_4, window_bounds = array<i64: 1, 64>}, {pipeline_mode = #tpu.pipeline_mode<synchronous>, transform_indices = @transform_5, window_bounds = array<i64: 64, 32>}, {pipeline_mode = #tpu.pipeline_mode<synchronous>, transform_indices = @transform_6, window_bounds = array<i64: 1, 32>}, {pipeline_mode = #tpu.pipeline_mode<synchronous>, transform_indices = @transform_7, window_bounds = array<i64: 32, 16>}, {pipeline_mode = #tpu.pipeline_mode<synchronous>, transform_indices = @transform_8, window_bounds = array<i64: 1, 16>}, {pipeline_mode = #tpu.pipeline_mode<synchronous>, transform_indices = @transform_9, window_bounds = array<i64: 8, 16>}, {pipeline_mode = #tpu.pipeline_mode<synchronous>, transform_indices = @transform_10, window_bounds = array<i64: 1, 1>}, {transform_indices = @transform_11, window_bounds = array<i64: 1, 1, 128>}]} {
    %c0 = arith.constant 0 : index
    %c0_0 = arith.constant 0 : index
    %0 = vector.load %arg1[%c0, %c0_0] : memref<128x320xf32, #tpu.memory_space<vmem>>, vector<128x320xf32>
    %c0_1 = arith.constant 0 : index
    %c0_2 = arith.constant 0 : index
    %1 = vector.load %arg2[%c0_1, %c0_2] : memref<320x128xf32, #tpu.memory_space<vmem>>, vector<320x128xf32>
    %cst = arith.constant dense<0.000000e+00> : vector<128x128xf32>
    %2 = tpu.matmul %0, %1, %cst {dimension_numbers = #tpu.dot_dimension_numbers<[1], [0], [0], [1], [0, 0, 1, 1], [], []>} : vector<128x320xf32>, vector<320x128xf32>, vector<128x128xf32> -> vector<128x128xf32>
    %c0_3 = arith.constant 0 : index
    %c0_4 = arith.constant 0 : index
    %3 = vector.load %arg3[%c0_3, %c0_4] : memref<1x128xf32, #tpu.memory_space<vmem>>, vector<1x128xf32>
    %4 = vector.broadcast %3 : vector<1x128xf32> to vector<128x128xf32>
    %5 = arith.addf %2, %4 : vector<128x128xf32>
    %cst_5 = arith.constant 0.000000e+00 : f32
    %6 = vector.broadcast %cst_5 : f32 to vector<128x128xf32>
    %7 = arith.maximumf %5, %6 : vector<128x128xf32>
    %c0_6 = arith.constant 0 : index
    %c0_7 = arith.constant 0 : index
    %8 = vector.load %arg4[%c0_6, %c0_7] : memref<128x64xf32, #tpu.memory_space<vmem>>, vector<128x64xf32>
    %cst_8 = arith.constant dense<0.000000e+00> : vector<128x64xf32>
    %9 = tpu.matmul %7, %8, %cst_8 {dimension_numbers = #tpu.dot_dimension_numbers<[1], [0], [0], [1], [0, 0, 1, 1], [], []>} : vector<128x128xf32>, vector<128x64xf32>, vector<128x64xf32> -> vector<128x64xf32>
    %c0_9 = arith.constant 0 : index
    %c0_10 = arith.constant 0 : index
    %10 = vector.load %arg5[%c0_9, %c0_10] : memref<1x64xf32, #tpu.memory_space<vmem>>, vector<1x64xf32>
    %11 = vector.broadcast %10 : vector<1x64xf32> to vector<128x64xf32>
    %12 = arith.addf %9, %11 : vector<128x64xf32>
    %cst_11 = arith.constant 0.000000e+00 : f32
    %13 = vector.broadcast %cst_11 : f32 to vector<128x64xf32>
    %14 = arith.maximumf %12, %13 : vector<128x64xf32>
    %c0_12 = arith.constant 0 : index
    %c0_13 = arith.constant 0 : index
    %15 = vector.load %arg6[%c0_12, %c0_13] : memref<64x32xf32, #tpu.memory_space<vmem>>, vector<64x32xf32>
    %cst_14 = arith.constant dense<0.000000e+00> : vector<128x32xf32>
    %16 = tpu.matmul %14, %15, %cst_14 {dimension_numbers = #tpu.dot_dimension_numbers<[1], [0], [0], [1], [0, 0, 1, 1], [], []>} : vector<128x64xf32>, vector<64x32xf32>, vector<128x32xf32> -> vector<128x32xf32>
    %c0_15 = arith.constant 0 : index
    %c0_16 = arith.constant 0 : index
    %17 = vector.load %arg7[%c0_15, %c0_16] : memref<1x32xf32, #tpu.memory_space<vmem>>, vector<1x32xf32>
    %18 = vector.broadcast %17 : vector<1x32xf32> to vector<128x32xf32>
    %19 = arith.addf %16, %18 : vector<128x32xf32>
    %cst_17 = arith.constant 0.000000e+00 : f32
    %20 = vector.broadcast %cst_17 : f32 to vector<128x32xf32>
    %21 = arith.maximumf %19, %20 : vector<128x32xf32>
    %c0_18 = arith.constant 0 : index
    %c0_19 = arith.constant 0 : index
    %22 = vector.load %arg8[%c0_18, %c0_19] : memref<32x16xf32, #tpu.memory_space<vmem>>, vector<32x16xf32>
    %cst_20 = arith.constant dense<0.000000e+00> : vector<128x16xf32>
    %23 = tpu.matmul %21, %22, %cst_20 {dimension_numbers = #tpu.dot_dimension_numbers<[1], [0], [0], [1], [0, 0, 1, 1], [], []>} : vector<128x32xf32>, vector<32x16xf32>, vector<128x16xf32> -> vector<128x16xf32>
    %c0_21 = arith.constant 0 : index
    %c0_22 = arith.constant 0 : index
    %24 = vector.load %arg9[%c0_21, %c0_22] : memref<1x16xf32, #tpu.memory_space<vmem>>, vector<1x16xf32>
    %25 = vector.broadcast %24 : vector<1x16xf32> to vector<128x16xf32>
    %26 = arith.addf %23, %25 : vector<128x16xf32>
    %cst_23 = arith.constant 0.000000e+00 : f32
    %27 = vector.broadcast %cst_23 : f32 to vector<128x16xf32>
    %28 = arith.maximumf %26, %27 : vector<128x16xf32>
    %c0_24 = arith.constant 0 : index
    %c0_25 = arith.constant 0 : index
    %29 = vector.load %arg10[%c0_24, %c0_25] : memref<8x16xf32, #tpu.memory_space<vmem>>, vector<8x16xf32>
    %cst_26 = arith.constant dense<0.000000e+00> : vector<8x128xf32>
    %30 = tpu.matmul %29, %28, %cst_26 {dimension_numbers = #tpu.dot_dimension_numbers<[1], [1], [0], [0], [0, 0, 1, 0], [], []>} : vector<8x16xf32>, vector<128x16xf32>, vector<8x128xf32> -> vector<8x128xf32>
    %31 = vector.extract_strided_slice %30 {offsets = [0, 0], sizes = [1, 128], strides = [1, 1]} : vector<8x128xf32> to vector<1x128xf32>
    %c0_27 = arith.constant 0 : index
    %c0_28 = arith.constant 0 : index
    %32 = vector.load %arg11[%c0_27, %c0_28] : memref<1x1xf32, #tpu.memory_space<vmem>>, vector<1x1xf32>
    %33 = vector.broadcast %32 : vector<1x1xf32> to vector<1x128xf32>
    %34 = arith.addf %31, %33 : vector<1x128xf32>
    %35 = vector.shape_cast %34 : vector<1x128xf32> to vector<1x1x128xf32>
    %c0_29 = arith.constant 0 : index
    %c0_30 = arith.constant 0 : index
    %c0_31 = arith.constant 0 : index
    %36 = vector.load %arg12[%c0_29, %c0_30, %c0_31] : memref<1x1x128xf32, #tpu.memory_space<vmem>>, vector<1x1x128xf32>
    tpu.vector_store %arg12[%c0_29, %c0_30, %c0_31], %35 {strides = array<i32>} : memref<1x1x128xf32, #tpu.memory_space<vmem>>, vector<1x1x128xf32>,
    return
  }
  func.func @transform_0(%arg0: i32) -> (i32, i32) {
    %c0_i32 = arith.constant 0 : i32
    %c0_i32_0 = arith.constant 0 : i32
    return %arg0, %c0_i32 : i32, i32
  }
  func.func @transform_1(%arg0: i32) -> (i32, i32) {
    %c0_i32 = arith.constant 0 : i32
    %c0_i32_0 = arith.constant 0 : i32
    %c0_i32_1 = arith.constant 0 : i32
    return %c0_i32, %c0_i32_0 : i32, i32
  }
  func.func @transform_2(%arg0: i32) -> (i32, i32) {
    %c0_i32 = arith.constant 0 : i32
    %c0_i32_0 = arith.constant 0 : i32
    %c0_i32_1 = arith.constant 0 : i32
    return %c0_i32, %c0_i32_0 : i32, i32
  }
  func.func @transform_3(%arg0: i32) -> (i32, i32) {
    %c0_i32 = arith.constant 0 : i32
    %c0_i32_0 = arith.constant 0 : i32
    %c0_i32_1 = arith.constant 0 : i32
    return %c0_i32, %c0_i32_0 : i32, i32
  }
  func.func @transform_4(%arg0: i32) -> (i32, i32) {
    %c0_i32 = arith.constant 0 : i32
    %c0_i32_0 = arith.constant 0 : i32
    %c0_i32_1 = arith.constant 0 : i32
    return %c0_i32, %c0_i32_0 : i32, i32
  }
  func.func @transform_5(%arg0: i32) -> (i32, i32) {
    %c0_i32 = arith.constant 0 : i32
    %c0_i32_0 = arith.constant 0 : i32
    %c0_i32_1 = arith.constant 0 : i32
    return %c0_i32, %c0_i32_0 : i32, i32
  }
  func.func @transform_6(%arg0: i32) -> (i32, i32) {
    %c0_i32 = arith.constant 0 : i32
    %c0_i32_0 = arith.constant 0 : i32
    %c0_i32_1 = arith.constant 0 : i32
    return %c0_i32, %c0_i32_0 : i32, i32
  }
  func.func @transform_7(%arg0: i32) -> (i32, i32) {
    %c0_i32 = arith.constant 0 : i32
    %c0_i32_0 = arith.constant 0 : i32
    %c0_i32_1 = arith.constant 0 : i32
    return %c0_i32, %c0_i32_0 : i32, i32
  }
  func.func @transform_8(%arg0: i32) -> (i32, i32) {
    %c0_i32 = arith.constant 0 : i32
    %c0_i32_0 = arith.constant 0 : i32
    %c0_i32_1 = arith.constant 0 : i32
    return %c0_i32, %c0_i32_0 : i32, i32
  }
  func.func @transform_9(%arg0: i32) -> (i32, i32) {
    %c0_i32 = arith.constant 0 : i32
    %c0_i32_0 = arith.constant 0 : i32
    %c0_i32_1 = arith.constant 0 : i32
    return %c0_i32, %c0_i32_0 : i32, i32
  }
  func.func @transform_10(%arg0: i32) -> (i32, i32) {
    %c0_i32 = arith.constant 0 : i32
    %c0_i32_0 = arith.constant 0 : i32
    %c0_i32_1 = arith.constant 0 : i32
    return %c0_i32, %c0_i32_0 : i32, i32
  }
  func.func @transform_11(%arg0: i32) -> (i32, i32, i32) {
    %c0_i32 = arith.constant 0 : i32
    %c0_i32_0 = arith.constant 0 : i32
    %c0_i32_1 = arith.constant 0 : i32
    return %arg0, %c0_i32, %c0_i32_0 : i32, i32, i32
  }
}

</mosaic_0001>

<bundles_post_ra>
// kernel: tpu_custom_call.1
= control target key start
LH: loop header
LB: loop body
LE: loop exit
PB: predicated region body
PF: predicated region fallthrough
CT: control target
= control target key end

     0   :  { %s3242_s0 = inlined_call_operand.hbm [shape: f32[300,320], index: 0, kind: input, shape index: {}]   ;;  %s3243_s1 = inlined_call_operand.vmem [shape: f32[320,128], index: 1, kind: input, shape index: {}]   ;;  %s3244_s2 = inlined_call_operand.vmem [shape: f32[1,128], index: 2, kind: input, shape index: {}]   ;;  %s3245_s3 = inlined_call_operand.vmem [shape: f32[128,64], index: 3, kind: input, shape index: {}]   ;;  %s3246_s4 = inlined_call_operand.vmem [shape: f32[1,64], index: 4, kind: input, shape index: {}]   ;;  %s3247_s5 = inlined_call_operand.vmem [shape: f32[64,32], index: 5, kind: input, shape index: {}]   ;;  %s3248_s6 = inlined_call_operand.hbm [shape: f32[1,32], index: 6, kind: input, shape index: {}]   ;;  %s3249_s7 = inlined_call_operand.vmem [shape: f32[32,16], index: 7, kind: input, shape index: {}]   ;;  %s3250_s8 = inlined_call_operand.vmem [shape: f32[1,16], index: 8, kind: input, shape index: {}]   ;;  %s3251_s9 = inlined_call_operand.vmem [shape: f32[8,16], index: 9, kind: input, shape index: {}]   ;;  %s3252_s10 = inlined_call_operand.<no memory space> [shape: f32[1,1], index: 10, kind: input, shape index: {}]   ;;  %s3253_s11 = inlined_call_operand.hbm [shape: f32[3,1,128], index: 11, kind: output, shape index: {}]  }
   0x1   :  { %3261 = sst [smem:[#allocation15_spill]] %s3248_s6  ;;  %v16_v0 = vstv %s3252_s10 }
   0x2   :  { %17 = vst [vmem:[#allocation2] sm:$0x1] %v16_v0 }
   0x3   :  { %18 = vsyncpa [#allocation4], 0 }
   0x4   :  { %20 = vsyncpa [#allocation4 + $0x1], 0 }
   0x5   :  { %21 = vsyncpa [#allocation7], 0 }
   0x6   :  { %22 = vsyncpa [#allocation5], 0 }
   0x7   :  { %24 = vsyncpa [#allocation5 + $0x1], 0  ;;  %s2634_s19 = smov 0   ;;  %s2636_s20 = smov 0  }
   0x8   :  { %s2638_s21 = smov 0   ;;  %s2640_s22 = smov 0  }
   0x9 LB: > { %3262 = sst [smem:[#allocation12_spill]] %s2556_s21  ;;  %s2655_s10 = sadd.s32 4294967295, %s2560_s22   ;;  %s2560_s22 = sphi %s2640_s22, %s3281_s22   ;;  %s2556_s21 = sphi %s2638_s21, %s3283_s21   ;;  %s2552_s20 = sphi %s2636_s20, %s3285_s20   ;;  %s2548_s19 = sphi %s2634_s19, %s3284_s19  }
   0xa   : > { %s1736_s23 = sadd.s32 4294967294, %s2560_s22   ;;  %s2659_s24 = sadd.s32 1, %s2560_s22  }
   0xb   : > { %3263 = sst [smem:[#allocation13_spill]] %s2659_s24  ;;  %s37_s25 = sadd.s32 1, %s2556_s21 }
   0xc   : > { %s34_s26 = ssub.s32 %s2560_s22, %s2659_s24  ;;  %p44_p0 = scmp.ne.s32.totalorder %s2556_s21, %s2552_s20 }
   0xd   : > { %p35_p1 = scmp.eq.s32.totalorder %s34_s26, 0  ;;  %p45_p2 = scmp.eq.s32.totalorder %s2560_s22, 0 }
   0xe   : > { %p50_p3 = scmp.ne.s32.totalorder %s2552_s20, %s2548_s19  ;;  %p3256_p4 = scmp.eq.s32.totalorder %s2655_s10, 0 }
   0xf   : > { %s2671_s27 = scalar_select %p35_p1, %s2556_s21, %s37_s25  }
  0x10   : > { %p2673_p5 = por %p45_p2, %p44_p0  ;;  %p2679_p6 = por %p3256_p4, %p50_p3 }
  0x11   : > { %3264 = sst [smem:[#allocation14_spill]] %s2671_s27  ;;  %p284_p7 = scmp.eq.s32.totalorder %s2655_s10, 2 }
  0x12   : > { %s3265_s28 = scalar_select %p2673_p5, 1, 0 }
  0x13   : > { %s3266_s29 = scalar_select %p2679_p6, 1, 0 }
  0x14   : > { %p290_p8 = scmp.eq.s32.totalorder %s1736_s23, 2  ;;  %p1737_p9 = scmp.ge.s32.totalorder %s2560_s22, 1 }
  0x15   : > { %p297_p10 = scmp.lt.s32.totalorder %s2560_s22, 4  ;;  %p2686_p11 = por %p284_p7, %p44_p0 }
  0x16   : > { %p2690_p12 = por %p290_p8, %p50_p3  ;;  %s2562_s14 = smov [#allocation6]  }
  0x17   : > { %s3267_s30 = scalar_select %p2686_p11, 1, 0 }
  0x18   : > { %s3268_s12 = scalar_select %p2690_p12, 1, 0 }
  0x19   : > { %p2694_p13 = pnand %p1737_p9, %p297_p10  ;;  %s325_s15 = sshll.u32 %s2562_s14, 4  ;;  %s326_s15 = int_to_ptr.vmem [resolvable:$true] %s325_s15 }
  0x1a   : > { %s3271_s6 = sld [smem:[#allocation15_spill]] }
  0x1b   : > { %s3269_s13 = scalar_select %p2694_p13, 1, 0 }
  0x1c   : > { %p2383_p1 = pneg %p2694_p13 }
  0x1e   : > { %p2702_p2 = pnand %p2383_p1, %p3256_p4 }
  0x20   : > { %s2434_s23 = scalar_lea.hbm %s3271_s6, 16  ;;  %p2436_p3 = pneg %p2702_p2 }
  0x21   : > { %p2435_p0 = scmp.ne.s32.totalorder %s3271_s6, %s2434_s23  ;;  %p2441_p9 = scmp.lt.u32.totalorder %s2434_s23, %s3271_s6 }
  0x23   : > { %p2437_p7 = pnand %p2436_p3, %p2435_p0 }
  0x25   : > { %p2438_p8 = pneg %p2437_p7 }
  0x27   : > { %p2443_p10 = pnand %p2441_p9, %p2438_p8 }
  0x29   : > { %2446 = shalt.err (!%p2443_p10)
}
  0x2a   : > { %s2447_s24 = scalar_lea.vmem %s326_s15, 16  ;;  %s2454_s17 = scalar_lea.vmem %s326_s15, 32 }
  0x2b   : > { %p2448_p1 = scmp.ne.s32.totalorder %s326_s15, %s2447_s24  ;;  %p2455_p11 = scmp.lt.s32.totalorder %s326_s15, %s326_s15 }
  0x2c   : > { %p2456_p6 = scmp.lt.s32.totalorder %s2454_s17, %s2447_s24 }
  0x2d   : > { %p2450_p4 = pnand %p2448_p1, %p2436_p3 }
  0x2e   : > { %p2457_p13 = por %p2456_p6, %p2455_p11 }
  0x2f   : > { %p2451_p12 = pneg %p2450_p4 }
  0x31   : > { %p2458_p5 = pnand %p2457_p13, %p2451_p12 }
  0x33   : > { %2461 = shalt.err (!%p2458_p5)
}
  0x34   : > { %2386 = dma.hbm_to_vmem [thread:$0]  (!%p2702_p2), %s3271_s6, 16, %s326_s15, [#allocation7]  }
  0x35   : > { %p1739_p0 = scmp.ge.s32.totalorder %s2560_s22, 3 }
  0x36   : > { %p3272_p7 = scmp.ne.s32.totalorder (!%p1739_p0), %s3265_s28, 0 }
  0x37   : > { %344 = sbr.rel (%p1739_p0) target bundleno = 98 (0x62), region = 56 }
  0x3e   : > { %347 = sbr.rel (!%p3272_p7) target bundleno = 98 (0x62), region = 60  ;;  %s348_s27 = sand.u32 (%p3272_p7), 1, %s2556_s21  }
  0x3f   : > { %s1740_s23 = sshll.u32 (%p3272_p7), %s2560_s22, 4  ;;  %s2373_s24 = smul.u32 (%p3272_p7), 384, %s348_s27 }
  0x40   : > { %s354_s26 = ssub.s32 (%p3272_p7), 38, %s1740_s23  ;;  %s2730_s17 = scalar_lea.sflag (%p3272_p7), [#allocation4], %s348_s27 }
  0x41   : > { %p355_p4 = scmp.lt.s32.totalorder (%p3272_p7), %s354_s26, 16  ;;  %s352_s15 = scalar_lea.vmem (%p3272_p7), [#allocation3], %s2373_s24 }
  0x45   : > { %s3287_s26 = smov (!%p355_p4, %s354_s26), 16 }
  0x46   : > { %s2727_s14 = smul.u32 384, %s3287_s26 }
  0x48   : > { %s360_s16 = ssub.s32 6144, %s2727_s14 }
  0x49   : > { %361 = vsyncadd %s2730_s17, %s360_s16  ;;  %p1743_p5 = scmp.ne.s32.totalorder %s2727_s14, 0  ;;  %s2374_s28 = smul.u32 6144, %s2560_s22 }
  0x4a   : > { %s367_s18 = sshll.u32 %s352_s15, 4  ;;  %s2466_s16 = scalar_lea.hbm %s3242_s0, 14592  ;;  %s2740_s18 = int_to_ptr.vmem [resolvable:$true] %s367_s18 }
  0x4b   : > { %s2738_s6 = scalar_lea.hbm %s3242_s0, %s2374_s28 }
  0x4c   : > { %s2462_s27 = scalar_lea.hbm %s2738_s6, %s2727_s14  ;;  %p2467_p13 = scmp.lt.u32.totalorder %s2738_s6, %s3242_s0 }
  0x4d   : > { %p2463_p6 = scmp.ne.s32.totalorder %s2738_s6, %s2462_s27  ;;  %p2468_p2 = scmp.lt.u32.totalorder %s2466_s16, %s2462_s27 }
  0x4e   : > { %p2470_p8 = scmp.lt.u32.totalorder %s2462_s27, %s2738_s6 }
  0x4f   : > { %p2464_p11 = pnand %p2463_p6, %p1743_p5  ;;  %p2469_p3 = por %p2468_p2, %p2467_p13 }
  0x51   : > { %p2465_p12 = pneg %p2464_p11  ;;  %p2471_p9 = por %p2470_p8, %p2469_p3 }
  0x53   : > { %p2472_p10 = pnand %p2471_p9, %p2465_p12 }
  0x55   : > { %2475 = shalt.err (!%p2472_p10)
}
  0x56   : > { %s2476_s28 = scalar_lea.vmem %s2740_s18, %s2727_s14  ;;  %s2563_s25 = smov [#allocation3]  }
  0x57   : > { %p2477_p1 = scmp.ne.s32.totalorder %s2740_s18, %s2476_s28  ;;  %s2480_s23 = sshll.u32 %s2563_s25, 4  ;;  %s2481_s23 = int_to_ptr.vmem [resolvable:$false] %s2480_s23 }
  0x58   : > { %s2482_s21 = scalar_lea.vmem %s2481_s23, 12288  ;;  %p2483_p4 = scmp.lt.s32.totalorder %s2740_s18, %s2481_s23 }
  0x59   : > { %p2478_p0 = pnand %p2477_p1, %p1743_p5  ;;  %p2484_p6 = scmp.lt.s32.totalorder %s2482_s21, %s2476_s28 }
  0x5b   : > { %p2479_p7 = pneg %p2478_p0  ;;  %p2485_p11 = por %p2484_p6, %p2483_p4 }
  0x5d   : > { %p2486_p13 = pnand %p2485_p11, %p2479_p7 }
  0x5f   : > { %2489 = shalt.err (!%p2486_p13)
}
  0x60   : > { %s2564_s27 = smov 384   ;;  %s2565_s24 = smov 24  }
  0x61   : > { %373 = dma.hbm_to_vmem [thread:$0]  (%p1743_p5), %s2738_s6, %s2727_s14, %s2740_s18, %s2730_s17, %s2564_s27, %s2564_s27, %s2565_s24  }
  0x62 PF: > { %p3273_p12 = scmp.ne.s32.totalorder %s3269_s13, 0 }
  0x63   : > { %s2770_s26 = sand.u32 (!%p3273_p12), 1, %s2552_s20   ;;  %p3274_p2 = scmp.ne.s32.totalorder (!%p3273_p12), %s3266_s29, 0 }
  0x64   : > { %379 = sbr.rel (%p3273_p12) target bundleno = 1317 (0x525), region = 64  ;;  %s382_s15 = scalar_lea.sflag (!%p3273_p12), [#allocation4], %s2770_s26 }
  0x65   : > { %s2375_s16 = smul.u32 (!%p3273_p12), 384, %s2770_s26 }
  0x67   : > { %s2774_s28 = scalar_lea.vmem (!%p3273_p12), [#allocation3], %s2375_s16 }
  0x6b   : > { %2535 = dma.done.wait (%p3274_p2), %s382_s15, 6144  }
  0x6c   : > { %2537 = vsyncadd (%p3274_p2), %s382_s15, 4294961152  ;;  %p3275_p5 = scmp.eq.s32.totalorder %s2655_s10, 0 }
  0x6e   : > { %2539 = dma.done.wait (%p3275_p5), [#allocation7], 16   ;;  %p3276_p3 = pmov %p3275_p5 }
  0x6f   : > { %v497_v1 = vld [vmem:[%s3243_s1 + $0x80] sm:$0xff]  ;;  %v498_v2 = vld [vmem:[%s3243_s1 + $0x88] sm:$0xff]  ;;  %v499_v6 = vld [vmem:[%s3243_s1 + $0x90] sm:$0xff]  ;;  %vm528_vm0 = vcmask 523264   ;;  %vm1302_vm1 = vcmask 261120   ;;  %vm2567_vm2 = vmmov 0  }
  0x70   : > { %2541 = vsyncadd (%p3276_p3), [#allocation7], 4294967280  ;;  %v481_v3 = vld [vmem:[%s3243_s1] sm:$0xff]  ;;  %v2221_v4 = vpack.c.bf16 %v498_v2, %v497_v1  ;;  %v482_v5 = vld [vmem:[%s3243_s1 + $0x8] sm:$0xff]  ;;  %vm1513_vm3 = vcmask 130048   ;;  %s1818_s16 = sshll.u32 %s2655_s10, 4 }
  0x71   : > { %v500_v7 = vld [vmem:[%s3243_s1 + $0x98] sm:$0xff]  ;;  %v2223_v8 = vpack.c.bf16 %v482_v5, %v481_v3  ;;  %v483_v10 = vld [vmem:[%s3243_s1 + $0x10] sm:$0xff]  ;;  %v501_v12 = vld [vmem:[%s3243_s1 + $0xa0] sm:$0xff]  ;;  %s426_s15 = scalar_lea.vmem [#allocation8], %s2770_s26  ;;  %s3199_s17 = scalar_lea.hbm %s3253_s11, %s1818_s16 }
  0x72   : > { %v2225_v9 = vpack.c.bf16 %v500_v7, %v499_v6  ;;  %v484_v11 = vld [vmem:[%s3243_s1 + $0x18] sm:$0xff]  ;;  %2222 = vmatprep.subr.bf16.mxu0 %v2221_v4  ;;  %v502_v13 = vld [vmem:[%s3243_s1 + $0xa8] sm:$0xff]  ;;  %v485_v16 = vld [vmem:[%s3243_s1 + $0x20] sm:$0xff]  ;;  %s1660_s6 = sshll.u32 %s426_s15, 4  ;;  %s1648_s18 = scalar_lea.sflag [#allocation5], %s2770_s26  ;;  %s3201_s6 = int_to_ptr.vmem [resolvable:$true] %s1660_s6 }
  0x73   : > { %2224 = vmatpush3.bf16.msra.mxu0 %v2223_v8  ;;  %v2227_v14 = vpack.c.bf16 %v484_v11, %v483_v10  ;;  %v2229_v15 = vpack.c.bf16 %v502_v13, %v501_v12  ;;  %v486_v17 = vld [vmem:[%s3243_s1 + $0x28] sm:$0xff]  ;;  %v503_v18 = vld [vmem:[%s3243_s1 + $0xb0] sm:$0xff]  ;;  %v504_v19 = vld [vmem:[%s3243_s1 + $0xb8] sm:$0xff]  ;;  %s2490_s25 = scalar_lea.vmem %s3201_s6, 16  ;;  %p3279_p9 = scmp.ne.s32.totalorder %s3267_s30, 0 }
  0x74   : > { %2226 = vmatprep.subr.bf16.mxu0 %v2225_v9  ;;  %v513_v20 = vld [vmem:[%s3243_s1 + $0x100] sm:$0xff]  ;;  %v514_v21 = vld [vmem:[%s3243_s1 + $0x108] sm:$0xff]  ;;  %v2231_v22 = vpack.c.bf16 %v486_v17, %v485_v16  ;;  %v487_v23 = vld [vmem:[%s3243_s1 + $0x30] sm:$0xff]  ;;  %v2233_v25 = vpack.c.bf16 %v504_v19, %v503_v18  ;;  %p2491_p8 = scmp.ne.s32.totalorder %s3201_s6, %s2490_s25  ;;  %s2570_s10 = smov [#allocation8]  }
  0x75   : > { %v2253_v24 = vpack.c.bf16 %v514_v21, %v513_v20  ;;  %v488_v26 = vld [vmem:[%s3243_s1 + $0x38] sm:$0xff]  ;;  %v515_v27 = vld [vmem:[%s3243_s1 + $0x110] sm:$0xff]  ;;  %v505_v29 = vld [vmem:[%s3243_s1 + $0xc0] sm:$0xff]  ;;  %s2494_s29 = sshll.u32 %s2570_s10, 4  ;;  %s2495_s29 = int_to_ptr.vmem [resolvable:$false] %s2494_s29 }
  0x76   : > { %v516_v28 = vld [vmem:[%s3243_s1 + $0x118] sm:$0xff]  ;;  %v506_v30 = vld [vmem:[%s3243_s1 + $0xc8] sm:$0xff]  ;;  %v517_v32 = vld [vmem:[%s3243_s1 + $0x120] sm:$0xff]  ;;  %v2235_v34 = vpack.c.bf16 %v488_v26, %v487_v23  ;;  %p2492_p10 = pnand %p2491_p8, %p3279_p9  ;;  %s2496_s23 = scalar_lea.vmem %s2495_s29, 32 }
  0x77   : > { %2228 = vmatpush3.bf16.msra.mxu0 %v2227_v14  ;;  %2254 = vmatprep.subr.bf16.mxu1 %v2253_v24  ;;  %v2257_v31 = vpack.c.bf16 %v516_v28, %v515_v27  ;;  %v518_v33 = vld [vmem:[%s3243_s1 + $0x128] sm:$0xff]  ;;  %v489_v35 = vld [vmem:[%s3243_s1 + $0x40] sm:$0xff]  ;;  %v2237_v38 = vpack.c.bf16 %v506_v30, %v505_v29  ;;  %v519_v40 = vld [vmem:[%s3243_s1 + $0x130] sm:$0xff]  ;;  %p2497_p0 = scmp.lt.s32.totalorder %s3201_s6, %s2495_s29  ;;  %p2498_p7 = scmp.lt.s32.totalorder %s2496_s23, %s2490_s25 }
  0x78   : > { %2230 = vmatprep.subr.bf16.mxu0 %v2229_v15  ;;  %2256 = vmatpush3.bf16.msra.mxu1 %v2253_v24  ;;  %v2261_v36 = vpack.c.bf16 %v518_v33, %v517_v32  ;;  %v434_v37 = vld [vmem:[%s2774_s28 + $0x8] sm:$0xff]  ;;  %v520_v41 = vld [vmem:[%s3243_s1 + $0x138] sm:$0xff]  ;;  %v509_v50 = vld [vmem:[%s3243_s1 + $0xe0] sm:$0xff]  ;;  %p2493_p1 = pneg %p2492_p10 }
  0x79   : > { %2258 = vmatprep.subr.bf16.mxu1 %v2257_v31  ;;  %v490_v39 = vld [vmem:[%s3243_s1 + $0x48] sm:$0xff]  ;;  %641 = vmatprep.mubr.f32.mxu0 %v434_v37  ;;  %v507_v42 = vld [vmem:[%s3243_s1 + $0xd0] sm:$0xff]  ;;  %v508_v43 = vld [vmem:[%s3243_s1 + $0xd8] sm:$0xff]  ;;  %v2265_v46 = vpack.c.bf16 %v520_v41, %v519_v40  ;;  %p2499_p4 = por %p2498_p7, %p2497_p0 }
  0x7a   : > { %v435_v44 = vld [vmem:[%s2774_s28 + $0x10] sm:$0xff]  ;;  %v2239_v45 = vpack.c.bf16 %v490_v39, %v489_v35  ;;  %v2241_v47 = vpack.c.bf16 %v508_v43, %v507_v42  ;;  %v510_v51 = vld [vmem:[%s3243_s1 + $0xe8] sm:$0xff]  ;;  %v493_v54 = vld [vmem:[%s3243_s1 + $0x60] sm:$0xff] }
  0x7b   : > { %2232 = vmatpush3.bf16.msra.mxu0 %v2231_v22  ;;  %2034 = vmatprep.mubr.msk.f32.mxu1 %vm528_vm0, %v435_v44  ;;  %v491_v48 = vld [vmem:[%s3243_s1 + $0x50] sm:$0xff]  ;;  %v492_v49 = vld [vmem:[%s3243_s1 + $0x58] sm:$0xff]  ;;  %v2245_v53 = vpack.c.bf16 %v510_v51, %v509_v50  ;;  %v494_v55 = vld [vmem:[%s3243_s1 + $0x68] sm:$0xff]  ;;  %p2500_p6 = pnand %p2499_p4, %p2493_p1 }
  0x7c   : > { %2234 = vmatprep.subr.bf16.mxu0 %v2233_v25  ;;  %2260 = vmatpush3.bf16.msra.mxu1 %v2257_v31  ;;  %v2243_v52 = vpack.c.bf16 %v492_v49, %v491_v48  ;;  %v511_v56 = vld [vmem:[%s3243_s1 + $0xf0] sm:$0xff]  ;;  %v512_v57 = vld [vmem:[%s3243_s1 + $0xf8] sm:$0xff]  ;;  %v2247_v59 = vpack.c.bf16 %v494_v55, %v493_v54  ;;  %v441_v60 = vld [vmem:[%s2774_s28 + $0x40] sm:$0xff] }
  0x7d   : > { %2262 = vmatprep.subr.bf16.mxu1 %v2261_v36  ;;  %v438_v58 = vld [vmem:[%s2774_s28 + $0x28] sm:$0xff]  ;;  %v2249_v61 = vpack.c.bf16 %v512_v57, %v511_v56  ;;  %v496_v63 = vld [vmem:[%s3243_s1 + $0x78] sm:$0xff]  ;;  %v883_v3 = vld [vmem:[%s3245_s3] sm:$0xff] }
  0x7e   : > { %v495_v62 = vld [vmem:[%s3243_s1 + $0x70] sm:$0xff]  ;;  %v444_v0 = vld [vmem:[%s2774_s28 + $0x58] sm:$0xff]  ;;  %v884_v4 = vld [vmem:[%s3245_s3 + $0x8] sm:$0xff] }
  0x7f   : > { %2236 = vmatpush3.bf16.msra.mxu0 %v2235_v34  ;;  %v2251_v1 = vpack.c.bf16 %v496_v63, %v495_v62  ;;  %v447_v2 = vld [vmem:[%s2774_s28 + $0x70] sm:$0xff]  ;;  %v2269_v5 = vpack.c.bf16 %v884_v4, %v883_v3  ;;  %v450_v8 = vld [vmem:[%s2774_s28 + $0x88] sm:$0xff]  ;;  %v433_v9 = vld [vmem:[%s2774_s28] sm:$0xff] }
  0x80   : > { %2238 = vmatprep.subr.bf16.mxu0 %v2237_v38  ;;  %2264 = vmatpush3.bf16.msra.mxu1 %v2261_v36  ;;  %v885_v6 = vld [vmem:[%s3245_s3 + $0x10] sm:$0xff]  ;;  %v886_v7 = vld [vmem:[%s3245_s3 + $0x18] sm:$0xff]  ;;  %v453_v10 = vld [vmem:[%s2774_s28 + $0xa0] sm:$0xff] }
  0x81   : > { %2266 = vmatprep.subr.bf16.mxu1 %v2265_v46  ;;  %v2273_v11 = vpack.c.bf16 %v886_v7, %v885_v6  ;;  %v437_v12 = vld [vmem:[%s2774_s28 + $0x20] sm:$0xff]  ;;  %v456_v15 = vld [vmem:[%s2774_s28 + $0xb8] sm:$0xff]  ;;  %v459_v17 = vld [vmem:[%s2774_s28 + $0xd0] sm:$0xff] }
  0x82   : > { %v887_v13 = vld [vmem:[%s3245_s3 + $0x20] sm:$0xff]  ;;  %v888_v14 = vld [vmem:[%s3245_s3 + $0x28] sm:$0xff]  ;;  %v889_v20 = vld [vmem:[%s3245_s3 + $0x30] sm:$0xff] }
  0x83   : > { %2240 = vmatpush3.bf16.msra.mxu0 %v2239_v45  ;;  %v436_v16 = vld [vmem:[%s2774_s28 + $0x18] sm:$0xff]  ;;  %v2277_v18 = vpack.c.bf16 %v888_v14, %v887_v13  ;;  %v462_v22 = vld [vmem:[%s2774_s28 + $0xe8] sm:$0xff]  ;;  %v439_v23 = vld [vmem:[%s2774_s28 + $0x30] sm:$0xff] }
  0x84   : > { %2242 = vmatprep.subr.bf16.mxu0 %v2241_v47  ;;  %2268 = vmatpush3.bf16.msra.mxu1 %v2265_v46  ;;  %v440_v19 = vld [vmem:[%s2774_s28 + $0x38] sm:$0xff]  ;;  %v465_v24 = vld [vmem:[%s2774_s28 + $0x100] sm:$0xff]  ;;  %v443_v26 = vld [vmem:[%s2774_s28 + $0x50] sm:$0xff] }
  0x85   : > { %2357 = vmatprep.subr.bf16.mxu1 %v2269_v5  ;;  %v890_v21 = vld [vmem:[%s3245_s3 + $0x38] sm:$0xff]  ;;  %v891_v27 = vld [vmem:[%s3245_s3 + $0x40] sm:$0xff]  ;;  %v892_v28 = vld [vmem:[%s3245_s3 + $0x48] sm:$0xff] }
  0x86   : > { %v2281_v25 = vpack.c.bf16 %v890_v21, %v889_v20  ;;  %v468_v29 = vld [vmem:[%s2774_s28 + $0x118] sm:$0xff]  ;;  %v442_v30 = vld [vmem:[%s2774_s28 + $0x48] sm:$0xff]  ;;  %v471_v31 = vld [vmem:[%s2774_s28 + $0x130] sm:$0xff]  ;;  %v2285_v32 = vpack.c.bf16 %v892_v28, %v891_v27 }
  0x87   : > { %2244 = vmatpush3.bf16.msra.mxu0 %v2243_v52  ;;  %2035 = vmatmul.mubr.msk.f32.vlgmr.msra.gmra.mrb[0].mxu1 %vm528_vm0, %v438_v58  ;;  %v446_v33 = vld [vmem:[%s2774_s28 + $0x68] sm:$0xff]  ;;  %v894_v35 = vld [vmem:[%s3245_s3 + $0x58] sm:$0xff]  ;;  %v445_v37 = vld [vmem:[%s2774_s28 + $0x60] sm:$0xff] }
  0x88   : > { %2246 = vmatprep.subr.bf16.mxu0 %v2245_v53  ;;  %2037 = vmatprep.mubr.msk.f32.mxu1 %vm528_vm0, %v441_v60  ;;  %v893_v34 = vld [vmem:[%s3245_s3 + $0x50] sm:$0xff]  ;;  %v477_v38 = vld [vmem:[%s2774_s28 + $0x160] sm:$0xff]  ;;  %v480_v43 = vld [vmem:[%s2774_s28 + $0x178] sm:$0xff] }
  0x89   : > { %2365 = vmatpush3.bf16.msra.mxu1 %v2269_v5  ;;  %v474_v36 = vld [vmem:[%s2774_s28 + $0x148] sm:$0xff]  ;;  %v2289_v39 = vpack.c.bf16 %v894_v35, %v893_v34  ;;  %v449_v40 = vld [vmem:[%s2774_s28 + $0x80] sm:$0xff]  ;;  %v448_v44 = vld [vmem:[%s2774_s28 + $0x78] sm:$0xff] }
  0x8a   : > { %2358 = vmatprep.subr.bf16.mxu1 %v2273_v11  ;;  %v895_v41 = vld [vmem:[%s3245_s3 + $0x60] sm:$0xff]  ;;  %v896_v42 = vld [vmem:[%s3245_s3 + $0x68] sm:$0xff]  ;;  %v451_v47 = vld [vmem:[%s2774_s28 + $0x90] sm:$0xff] }
  0x8b   : > { %2248 = vmatpush3.bf16.msra.mxu0 %v2247_v59  ;;  %2038 = vmatmul.mubr.msk.f32.gmra.mrb[2].mxu1 %vm528_vm0, %v444_v0  ;;  %v2293_v45 = vpack.c.bf16 %v896_v42, %v895_v41  ;;  %v452_v46 = vld [vmem:[%s2774_s28 + $0x98] sm:$0xff]  ;;  %v455_v48 = vld [vmem:[%s2774_s28 + $0xb0] sm:$0xff]  ;;  %v454_v49 = vld [vmem:[%s2774_s28 + $0xa8] sm:$0xff] }
  0x8c   : > { %2250 = vmatprep.subr.bf16.mxu0 %v2249_v61  ;;  %2040 = vmatprep.mubr.msk.f32.mxu1 %vm528_vm0, %v447_v2  ;;  %v458_v50 = vld [vmem:[%s2774_s28 + $0xc8] sm:$0xff]  ;;  %v457_v51 = vld [vmem:[%s2774_s28 + $0xc0] sm:$0xff]  ;;  %v460_v53 = vld [vmem:[%s2774_s28 + $0xd8] sm:$0xff] }
  0x8d   : > { %2366 = vmatpush3.bf16.msra.mxu1 %v2273_v11  ;;  %v461_v52 = vld [vmem:[%s2774_s28 + $0xe0] sm:$0xff]  ;;  %v464_v54 = vld [vmem:[%s2774_s28 + $0xf8] sm:$0xff]  ;;  %v463_v55 = vld [vmem:[%s2774_s28 + $0xf0] sm:$0xff] }
  0x8e   : > { %2359 = vmatprep.subr.bf16.mxu1 %v2277_v18  ;;  %v467_v56 = vld [vmem:[%s2774_s28 + $0x110] sm:$0xff]  ;;  %v466_v57 = vld [vmem:[%s2774_s28 + $0x108] sm:$0xff]  ;;  %v469_v59 = vld [vmem:[%s2774_s28 + $0x120] sm:$0xff] }
  0x8f   : > { %2252 = vmatpush3.bf16.msra.mxu0 %v2251_v1  ;;  %2041 = vmatmul.mubr.msk.f32.gmra.mrb[4].mxu1 %vm528_vm0, %v450_v8  ;;  %v470_v58 = vld [vmem:[%s2774_s28 + $0x128] sm:$0xff]  ;;  %v473_v60 = vld [vmem:[%s2774_s28 + $0x140] sm:$0xff]  ;;  %v472_v61 = vld [vmem:[%s2774_s28 + $0x138] sm:$0xff] }
  0x90   : > { %2270 = vmatprep.subr.bf16.mxu0 %v2269_v5  ;;  %2043 = vmatprep.mubr.msk.f32.mxu1 %vm528_vm0, %v453_v10  ;;  %v476_v62 = vld [vmem:[%s2774_s28 + $0x158] sm:$0xff]  ;;  %v475_v63 = vld [vmem:[%s2774_s28 + $0x150] sm:$0xff]  ;;  %v478_v1 = vld [vmem:[%s2774_s28 + $0x168] sm:$0xff] }
  0x91   : > { %2367 = vmatpush3.bf16.msra.mxu1 %v2277_v18  ;;  %v479_v0 = vld [vmem:[%s2774_s28 + $0x170] sm:$0xff]  ;;  %v1068_v6 = vld [vmem:[%s3247_s5 + $0x8] sm:$0xff]  ;;  %vm3149_vm4 = vmpackc.low %vm1513_vm3, %vm1513_vm3 }
  0x92   : > { %642 = vmatmul.mubr.f32.vlgmr.msra.gmra.mrb[0].mxu0 %v433_v9  ;;  %2360 = vmatprep.subr.bf16.mxu1 %v2281_v25  ;;  %v897_v2 = vld [vmem:[%s3245_s3 + $0x70] sm:$0xff]  ;;  %v898_v3 = vld [vmem:[%s3245_s3 + $0x78] sm:$0xff] }
  0x93   : > { %646 = vmatprep.mubr.f32.mxu0 %v437_v12  ;;  %2272 = vmatpush3.bf16.msra.mxu0 %v2269_v5  ;;  %v2297_v4 = vpack.c.bf16 %v898_v3, %v897_v2  ;;  %v1067_v5 = vld [vmem:[%s3247_s5] sm:$0xff] }
  0x94   : > { %2274 = vmatprep.subr.bf16.mxu0 %v2273_v11  ;;  %2044 = vmatmul.mubr.msk.f32.gmra.mrb[6].mxu1 %vm528_vm0, %v456_v15  ;;  %v3022_v7 = vpack.c.bf16 %v1068_v6, %v1067_v5  ;;  %v1071_v6 = vld [vmem:[%s3247_s5 + $0x20] sm:$0xff] }
  0x95   : > { %2046 = vmatprep.mubr.msk.f32.mxu1 %vm528_vm0, %v459_v17  ;;  %2368 = vmatpush3.bf16.msra.mxu1 %v2281_v25 }
  0x96   : > { %647 = vmatmul.mubr.f32.gmra.mrb[2].mxu0 %v436_v16  ;;  %2361 = vmatprep.subr.bf16.mxu1 %v2285_v32  ;;  %v3028_v16 = vld [vmem:[%s3244_s2] ss:$0 sm:$0xff] }
  0x97   : > { %651 = vmatprep.mubr.f32.mxu0 %v440_v19  ;;  %2276 = vmatpush3.bf16.msra.mxu0 %v2273_v11 }
  0x98   : > { %2278 = vmatprep.subr.bf16.mxu0 %v2277_v18  ;;  %2047 = vmatmul.mubr.msk.f32.gmra.mrb[8].mxu1 %vm528_vm0, %v462_v22 }
  0x99   : > { %2049 = vmatprep.mubr.msk.f32.mxu1 %vm528_vm0, %v465_v24  ;;  %2369 = vmatpush3.bf16.msra.mxu1 %v2285_v32 }
  0x9a   : > { %652 = vmatmul.mubr.f32.gmra.mrb[4].mxu0 %v439_v23  ;;  %2362 = vmatprep.subr.bf16.mxu1 %v2289_v39 }
  0x9b   : > { %656 = vmatprep.mubr.f32.mxu0 %v443_v26  ;;  %2280 = vmatpush3.bf16.msra.mxu0 %v2277_v18 }
  0x9c   : > { %2282 = vmatprep.subr.bf16.mxu0 %v2281_v25  ;;  %2050 = vmatmul.mubr.msk.f32.gmra.mrb[10].mxu1 %vm528_vm0, %v468_v29 }
  0x9d   : > { %2052 = vmatprep.mubr.msk.f32.mxu1 %vm528_vm0, %v471_v31  ;;  %2370 = vmatpush3.bf16.msra.mxu1 %v2289_v39 }
  0x9e   : > { %657 = vmatmul.mubr.f32.gmra.mrb[6].mxu0 %v442_v30  ;;  %2363 = vmatprep.subr.bf16.mxu1 %v2293_v45 }
  0x9f   : > { %661 = vmatprep.mubr.f32.mxu0 %v446_v33  ;;  %2284 = vmatpush3.bf16.msra.mxu0 %v2281_v25 }
  0xa0   : > { %2286 = vmatprep.subr.bf16.mxu0 %v2285_v32  ;;  %2053 = vmatmul.mubr.msk.f32.gmra.mrb[12].mxu1 %vm528_vm0, %v474_v36 }
  0xa1   : > { %2055 = vmatprep.mubr.msk.f32.mxu1 %vm528_vm0, %v477_v38  ;;  %2371 = vmatpush3.bf16.msra.mxu1 %v2293_v45 }
  0xa2   : > { %662 = vmatmul.mubr.f32.gmra.mrb[8].mxu0 %v445_v37  ;;  %2364 = vmatprep.subr.bf16.mxu1 %v2297_v4 }
  0xa3   : > { %666 = vmatprep.mubr.f32.mxu0 %v449_v40  ;;  %2288 = vmatpush3.bf16.msra.mxu0 %v2285_v32 }
  0xa4   : > { %2290 = vmatprep.subr.bf16.mxu0 %v2289_v39  ;;  %2056 = vmatmul.mubr.msk.f32.gmra.mrb[14].mxu1 %vm528_vm0, %v480_v43 }
  0xa5   : > { %2372 = vmatpush3.bf16.msra.mxu1 %v2297_v4 }
  0xa6   : > { %667 = vmatmul.mubr.f32.gmra.mrb[10].mxu0 %v448_v44  ;;  %2302 = vmatprep.subr.bf16.mxu1 %v3022_v7 }
  0xa7   : > { %671 = vmatprep.mubr.f32.mxu0 %v452_v46  ;;  %2292 = vmatpush3.bf16.msra.mxu0 %v2289_v39 }
  0xa8   : > { %2294 = vmatprep.subr.bf16.mxu0 %v2293_v45 }
  0xaa   : > { %672 = vmatmul.mubr.f32.gmra.mrb[12].mxu0 %v451_v47 }
  0xab   : > { %676 = vmatprep.mubr.f32.mxu0 %v455_v48  ;;  %2296 = vmatpush3.bf16.msra.mxu0 %v2293_v45 }
  0xac   : > { %2298 = vmatprep.subr.bf16.mxu0 %v2297_v4 }
  0xae   : > { %677 = vmatmul.mubr.f32.gmra.mrb[14].mxu0 %v454_v49 }
  0xaf   : > { %681 = vmatprep.mubr.f32.mxu0 %v458_v50  ;;  %2300 = vmatpush3.bf16.msra.mxu0 %v2297_v4 }
  0xb2   : > { %682 = vmatmul.mubr.f32.gmra.mrb[16].mxu0 %v457_v51 }
  0xb3   : > { %686 = vmatprep.mubr.f32.mxu0 %v461_v52 }
  0xb6   : > { %687 = vmatmul.mubr.f32.gmra.mrb[18].mxu0 %v460_v53 }
  0xb7   : > { %691 = vmatprep.mubr.f32.mxu0 %v464_v54 }
  0xba   : > { %692 = vmatmul.mubr.f32.gmra.mrb[20].mxu0 %v463_v55 }
  0xbb   : > { %696 = vmatprep.mubr.f32.mxu0 %v467_v56 }
  0xbe   : > { %697 = vmatmul.mubr.f32.gmra.mrb[22].mxu0 %v466_v57 }
  0xbf   : > { %701 = vmatprep.mubr.f32.mxu0 %v470_v58 }
  0xc2   : > { %702 = vmatmul.mubr.f32.gmra.mrb[24].mxu0 %v469_v59 }
  0xc3   : > { %706 = vmatprep.mubr.f32.mxu0 %v473_v60 }
  0xc6   : > { %707 = vmatmul.mubr.f32.gmra.mrb[26].mxu0 %v472_v61  ;;  %v1069_v61 = vld [vmem:[%s3247_s5 + $0x10] sm:$0xff] }
  0xc7   : > { %711 = vmatprep.mubr.f32.mxu0 %v476_v62  ;;  %v1070_v62 = vld [vmem:[%s3247_s5 + $0x18] sm:$0xff] }
  0xc8   : > { %v2305_v4 = vpack.c.bf16 %v1070_v62, %v1069_v61 }
  0xca   : > { %712 = vmatmul.mubr.f32.gmra.mrb[28].mxu0 %v475_v63 }
  0xcb   : > { %716 = vmatprep.mubr.f32.mxu0 %v479_v0 }
  0xce   : > { %717 = vmatmul.mubr.f32.gmra.mrb[30].mxu0 %v478_v1 }
 0x15a   : > { %v2036_v8 = vpop.f32.mrb[0].mxu1 }
 0x15b   : > { %v788_v9 = vpop.f32.mrb[1].mxu1 }
 0x15e   : > { %v2039_v10 = vpop.f32.mrb[2].mxu1 }
 0x15f   : > { %v798_v11 = vpop.f32.mrb[3].mxu1 }
 0x162   : > { %v2042_v12 = vpop.f32.mrb[4].mxu1 }
 0x163   : > { %v808_v14 = vpop.f32.mrb[5].mxu1 }
 0x165   : > { %v1853_v13 = vpop.f32.mrb[0].mxu0 }
 0x166   : > { %v1854_v15 = vpop.f32.mrb[1].mxu0 }
 0x167   : > { %v1855_v17 = vadd.f32 %v1854_v15, %v1853_v13  ;;  %v3030_v18 = vpop.f32.mrb[6].mxu1 }
 0x168   : > { %v818_v21 = vpop.f32.mrb[7].mxu1 }
 0x169   : > { %v1856_v19 = vpop.f32.mrb[2].mxu0  ;;  %v644_v20 = vadd.f32 %v1855_v17, %v3028_v16 }
 0x16a   : > { %v1857_v22 = vpop.f32.mrb[3].mxu0 }
 0x16b   : > { %v1858_v23 = vadd.f32 %v1857_v22, %v1856_v19  ;;  %v789_v24 = vadd.f32 %v788_v9, %v644_v20  ;;  %v3033_v25 = vpop.f32.mrb[8].mxu1 }
 0x16c   : > { %v3036_v29 = vpop.f32.mrb[9].mxu1 }
 0x16d   : > { %v649_v26 = vadd.f32 %v1858_v23, %v3028_v16  ;;  %v867_v27 = vmax.f32 %v789_v24, 0.0  ;;  %v1859_v28 = vpop.f32.mrb[4].mxu0 }
 0x16e   : > { %v1860_v30 = vpop.f32.mrb[5].mxu0 }
 0x16f   : > { %v794_v31 = vadd.f32 %v2036_v8, %v649_v26  ;;  %v1861_v32 = vadd.f32 %v1860_v30, %v1859_v28  ;;  %2090 = vmatprep.mubr.f32.mxu0 %v867_v27  ;;  %v3038_v33 = vpop.f32.mrb[10].mxu1  ;;  %v1072_v8 = vld [vmem:[%s3247_s5 + $0x28] sm:$0xff] }
 0x170   : > { %v3041_v37 = vpop.f32.mrb[11].mxu1 }
 0x171   : > { %v868_v34 = vmax.f32 %v794_v31, 0.0  ;;  %v1862_v35 = vpop.f32.mrb[6].mxu0  ;;  %v654_v36 = vadd.f32 %v1861_v32, %v3028_v16 }
 0x172   : > { %v1863_v38 = vpop.f32.mrb[7].mxu0 }
 0x173   : > { %v1864_v39 = vadd.f32 %v1863_v38, %v1862_v35  ;;  %v799_v40 = vadd.f32 %v798_v11, %v654_v36  ;;  %2091 = vmatmul.mubr.f32.vlgmr.msra.gmra.mrb[32].mxu0 %v868_v34  ;;  %v3043_v41 = vpop.f32.mrb[12].mxu1 }
 0x174   : > { %v3046_v45 = vpop.f32.mrb[13].mxu1 }
 0x175   : > { %v659_v42 = vadd.f32 %v1864_v39, %v3028_v16  ;;  %v869_v43 = vmax.f32 %v799_v40, 0.0  ;;  %v1865_v44 = vpop.f32.mrb[8].mxu0 }
 0x176   : > { %v1866_v46 = vpop.f32.mrb[9].mxu0 }
 0x177   : > { %v1867_v47 = vadd.f32 %v1866_v46, %v1865_v44  ;;  %2093 = vmatprep.mubr.f32.mxu0 %v869_v43  ;;  %v804_v48 = vadd.f32 %v2039_v10, %v659_v42  ;;  %v3048_v49 = vpop.f32.mrb[14].mxu1 }
 0x178   : > { %v3051_v53 = vpop.f32.mrb[15].mxu1 }
 0x179   : > { %v1868_v50 = vpop.f32.mrb[10].mxu0  ;;  %v664_v51 = vadd.f32 %v1867_v47, %v3028_v16  ;;  %v870_v52 = vmax.f32 %v804_v48, 0.0 }
 0x17a   : > { %v1869_v54 = vpop.f32.mrb[11].mxu0 }
 0x17b   : > { %v1870_v55 = vadd.f32 %v1869_v54, %v1868_v50  ;;  %v809_v56 = vadd.f32 %v808_v14, %v664_v51  ;;  %2094 = vmatmul.mubr.f32.gmra.mrb[34].mxu0 %v870_v52  ;;  %v2309_v14 = vpack.c.bf16 %v1072_v8, %v1071_v6 }
 0x17d   : > { %v669_v57 = vadd.f32 %v1870_v55, %v3028_v16  ;;  %v871_v58 = vmax.f32 %v809_v56, 0.0  ;;  %v1871_v59 = vpop.f32.mrb[12].mxu0 }
 0x17e   : > { %v1872_v60 = vpop.f32.mrb[13].mxu0 }
 0x17f   : > { %v814_v63 = vadd.f32 %v2042_v12, %v669_v57  ;;  %v1873_v0 = vadd.f32 %v1872_v60, %v1871_v59  ;;  %2096 = vmatprep.mubr.f32.mxu1 %v871_v58 }
 0x181   : > { %v872_v1 = vmax.f32 %v814_v63, 0.0  ;;  %v1874_v2 = vpop.f32.mrb[14].mxu0  ;;  %v674_v3 = vadd.f32 %v1873_v0, %v3028_v16 }
 0x182   : > { %v1875_v5 = vpop.f32.mrb[15].mxu0 }
 0x183   : > { %v1876_v9 = vadd.f32 %v1875_v5, %v1874_v2  ;;  %v819_v10 = vadd.f32 %v818_v21, %v674_v3  ;;  %2097 = vmatmul.mubr.f32.vlgmr.msra.gmra.mrb[16].mxu1 %v872_v1  ;;  %v1074_v3 = vld [vmem:[%s3247_s5 + $0x38] sm:$0xff]  ;;  %v1766_v5 = vld [vmem:[%s3246_s4] ss:$0 sm:$0xff] }
 0x184   : > { %2304 = vmatpush3.bf16.msra.mxu1 %v3022_v7 }
 0x185   : > { %v679_v11 = vadd.f32 %v1876_v9, %v3028_v16  ;;  %v873_v12 = vmax.f32 %v819_v10, 0.0  ;;  %v1877_v13 = vpop.f32.mrb[16].mxu0  ;;  %2306 = vmatprep.subr.bf16.mxu1 %v2305_v4 }
 0x186   : > { %v1878_v15 = vpop.f32.mrb[17].mxu0 }
 0x187   : > { %v1879_v17 = vadd.f32 %v1878_v15, %v1877_v13  ;;  %2099 = vmatprep.mubr.f32.mxu1 %v873_v12  ;;  %v824_v19 = vadd.f32 %v3030_v18, %v679_v11 }
 0x188   : > { %2308 = vmatpush3.bf16.msra.mxu1 %v2305_v4 }
 0x189   : > { %v1880_v20 = vpop.f32.mrb[18].mxu0  ;;  %v684_v22 = vadd.f32 %v1879_v17, %v3028_v16  ;;  %v874_v23 = vmax.f32 %v824_v19, 0.0  ;;  %2310 = vmatprep.subr.bf16.mxu1 %v2309_v14 }
 0x18a   : > { %v1881_v21 = vpop.f32.mrb[19].mxu0 }
 0x18b   : > { %v1882_v24 = vadd.f32 %v1881_v21, %v1880_v20  ;;  %v829_v7 = vadd.f32 %v3036_v29, %v684_v22  ;;  %2100 = vmatmul.mubr.f32.gmra.mrb[18].mxu1 %v874_v23 }
 0x18c   : > { %2312 = vmatpush3.bf16.msra.mxu1 %v2309_v14 }
 0x18d   : > { %v689_v26 = vadd.f32 %v1882_v24, %v3028_v16  ;;  %v875_v27 = vmax.f32 %v829_v7, 0.0  ;;  %v1883_v28 = vpop.f32.mrb[20].mxu0 }
 0x18e   : > { %v1884_v30 = vpop.f32.mrb[21].mxu0 }
 0x18f   : > { %v1885_v31 = vadd.f32 %v1884_v30, %v1883_v28  ;;  %2102 = vmatprep.mubr.f32.mxu1 %v875_v27  ;;  %v834_v18 = vadd.f32 %v3033_v25, %v689_v26 }
 0x191   : > { %v1886_v32 = vpop.f32.mrb[22].mxu0  ;;  %v694_v34 = vadd.f32 %v1885_v31, %v3028_v16  ;;  %v876_v35 = vmax.f32 %v834_v18, 0.0 }
 0x192   : > { %v1887_v36 = vpop.f32.mrb[23].mxu0 }
 0x193   : > { %v1888_v38 = vadd.f32 %v1887_v36, %v1886_v32  ;;  %v839_v39 = vadd.f32 %v3041_v37, %v694_v34  ;;  %2103 = vmatmul.mubr.f32.gmra.mrb[20].mxu1 %v876_v35 }
 0x195   : > { %v699_v29 = vadd.f32 %v1888_v38, %v3028_v16  ;;  %v877_v40 = vmax.f32 %v839_v39, 0.0  ;;  %v1889_v42 = vpop.f32.mrb[24].mxu0 }
 0x196   : > { %v1890_v43 = vpop.f32.mrb[25].mxu0 }
 0x197   : > { %v1891_v44 = vadd.f32 %v1890_v43, %v1889_v42  ;;  %2105 = vmatprep.mubr.f32.mxu1 %v877_v40  ;;  %v844_v46 = vadd.f32 %v3038_v33, %v699_v29 }
 0x199   : > { %v1892_v47 = vpop.f32.mrb[26].mxu0  ;;  %v704_v25 = vadd.f32 %v1891_v44, %v3028_v16  ;;  %v878_v48 = vmax.f32 %v844_v46, 0.0 }
 0x19a   : > { %v1893_v50 = vpop.f32.mrb[27].mxu0 }
 0x19b   : > { %v1894_v51 = vadd.f32 %v1893_v50, %v1892_v47  ;;  %v849_v52 = vadd.f32 %v3046_v45, %v704_v25  ;;  %2106 = vmatmul.mubr.f32.gmra.mrb[22].mxu1 %v878_v48 }
 0x19d   : > { %v709_v37 = vadd.f32 %v1894_v51, %v3028_v16  ;;  %v879_v54 = vmax.f32 %v849_v52, 0.0  ;;  %v1895_v55 = vpop.f32.mrb[28].mxu0 }
 0x19e   : > { %v1896_v56 = vpop.f32.mrb[29].mxu0 }
 0x19f   : > { %v1897_v57 = vadd.f32 %v1896_v56, %v1895_v55  ;;  %2108 = vmatprep.mubr.f32.mxu1 %v879_v54  ;;  %v854_v58 = vadd.f32 %v3043_v41, %v709_v37  ;;  %v1073_v41 = vld [vmem:[%s3247_s5 + $0x30] sm:$0xff] }
 0x1a0   : > { %v2313_v4 = vpack.c.bf16 %v1074_v3, %v1073_v41 }
 0x1a1   : > { %v1898_v59 = vpop.f32.mrb[30].mxu0  ;;  %v714_v33 = vadd.f32 %v1897_v57, %v3028_v16  ;;  %v880_v60 = vmax.f32 %v854_v58, 0.0 }
 0x1a2   : > { %v1899_v61 = vpop.f32.mrb[31].mxu0  ;;  %2314 = vmatprep.subr.bf16.mxu1 %v2313_v4 }
 0x1a3   : > { %v1900_v62 = vadd.f32 %v1899_v61, %v1898_v59  ;;  %v859_v63 = vadd.f32 %v3051_v53, %v714_v33  ;;  %2109 = vmatmul.mubr.f32.gmra.mrb[24].mxu1 %v880_v60  ;;  %v1293_v33 = vld [vmem:[%s3249_s7 + $0x10] sm:$0xff]  ;;  %v1294_v60 = vld [vmem:[%s3249_s7 + $0x18] sm:$0xff] }
 0x1a4   : > { %2316 = vmatpush3.bf16.msra.mxu1 %v2313_v4  ;;  %v2321_v61 = vpack.c.bf16 %v1294_v60, %v1293_v33 }
 0x1a5   : > { %v719_v45 = vadd.f32 %v1900_v62, %v3028_v16  ;;  %v881_v0 = vmax.f32 %v859_v63, 0.0  ;;  %v1291_v16 = vld [vmem:[%s3249_s7] sm:$0xff] }
 0x1a6   : > { %v1767_v62 = vld [vmem:[#allocation6] ss:$0 sm:$0xff] }
 0x1a7   : > { %2111 = vmatprep.mubr.f32.mxu1 %v881_v0  ;;  %v864_v1 = vadd.f32 %v3048_v49, %v719_v45  ;;  %v1292_v49 = vld [vmem:[%s3249_s7 + $0x8] sm:$0xff] }
 0x1a8   : > { %v2317_v53 = vpack.c.bf16 %v1292_v49, %v1291_v16 }
 0x1a9   : > { %v882_v2 = vmax.f32 %v864_v1, 0.0 }
 0x1aa   : > { %2318 = vmatprep.subr.bf16.mxu0 %v2317_v53 }
 0x1ab   : > { %2112 = vmatmul.mubr.f32.gmra.mrb[26].mxu1 %v882_v2  ;;  %2320 = vmatpush3.bf16.msra.mxu0 %v2317_v53 }
 0x1ac   : > { %2322 = vmatprep.subr.bf16.mxu0 %v2321_v61 }
 0x1af   : > { %2324 = vmatpush3.bf16.msra.mxu0 %v2321_v61 }
 0x246   : > { %v2092_v6 = vpop.f32.mrb[32].mxu0 }
 0x247   : > { %v978_v8 = vadd.f32 %v2092_v6, %v1766_v5  ;;  %v972_v9 = vpop.f32.mrb[33].mxu0 }
 0x248   : > { %v973_v10 = vadd.f32 %v1766_v5, %v972_v9 }
 0x249   : > { %v1052_v12 = vmax.f32 %v978_v8, 0.0 }
 0x24a   : > { %v1051_v11 = vmax.f32 %v973_v10, 0.0 }
 0x24c   : > { %2130 = vmatprep.mubr.msk.f32.mxu1 %vm528_vm0, %v1051_v11 }
 0x24d   : > { %2131 = vmatmul.mubr.msk.f32.vlgmr.msra.gmra.mrb[28].mxu1 %vm528_vm0, %v1052_v12 }
 0x24e   : > { %v2095_v13 = vpop.f32.mrb[34].mxu0 }
 0x24f   : > { %v988_v14 = vadd.f32 %v2095_v13, %v1766_v5  ;;  %v982_v15 = vpop.f32.mrb[35].mxu0 }
 0x250   : > { %v983_v17 = vadd.f32 %v1766_v5, %v982_v15 }
 0x251   : > { %v1054_v20 = vmax.f32 %v988_v14, 0.0 }
 0x252   : > { %v1053_v19 = vmax.f32 %v983_v17, 0.0 }
 0x254   : > { %2133 = vmatprep.mubr.msk.f32.mxu1 %vm528_vm0, %v1053_v19 }
 0x255   : > { %2134 = vmatmul.mubr.msk.f32.gmra.mrb[30].mxu1 %vm528_vm0, %v1054_v20 }
 0x256   : > { %v2098_v22 = vpop.f32.mrb[16].mxu1 }
 0x257   : > { %v998_v23 = vadd.f32 %v2098_v22, %v1766_v5  ;;  %v992_v21 = vpop.f32.mrb[17].mxu1 }
 0x258   : > { %v993_v24 = vadd.f32 %v1766_v5, %v992_v21 }
 0x259   : > { %v1056_v26 = vmax.f32 %v998_v23, 0.0 }
 0x25a   : > { %v1055_v7 = vmax.f32 %v993_v24, 0.0 }
 0x25c   : > { %2136 = vmatprep.mubr.msk.f32.mxu1 %vm528_vm0, %v1055_v7 }
 0x25d   : > { %2137 = vmatmul.mubr.msk.f32.gmra.mrb[32].mxu1 %vm528_vm0, %v1056_v26 }
 0x25e   : > { %v2101_v27 = vpop.f32.mrb[18].mxu1 }
 0x25f   : > { %v1008_v28 = vadd.f32 %v2101_v27, %v1766_v5  ;;  %v1002_v30 = vpop.f32.mrb[19].mxu1 }
 0x260   : > { %v1003_v31 = vadd.f32 %v1766_v5, %v1002_v30 }
 0x261   : > { %v1058_v32 = vmax.f32 %v1008_v28, 0.0 }
 0x262   : > { %v1057_v18 = vmax.f32 %v1003_v31, 0.0 }
 0x264   : > { %2139 = vmatprep.mubr.msk.f32.mxu1 %vm528_vm0, %v1057_v18 }
 0x265   : > { %2140 = vmatmul.mubr.msk.f32.gmra.mrb[34].mxu1 %vm528_vm0, %v1058_v32 }
 0x266   : > { %v2104_v34 = vpop.f32.mrb[20].mxu1 }
 0x267   : > { %v1018_v35 = vadd.f32 %v2104_v34, %v1766_v5  ;;  %v1012_v36 = vpop.f32.mrb[21].mxu1 }
 0x268   : > { %v1013_v38 = vadd.f32 %v1766_v5, %v1012_v36 }
 0x269   : > { %v1060_v29 = vmax.f32 %v1018_v35, 0.0 }
 0x26a   : > { %v1059_v39 = vmax.f32 %v1013_v38, 0.0 }
 0x26c   : > { %2142 = vmatprep.mubr.msk.f32.mxu1 %vm528_vm0, %v1059_v39 }
 0x26d   : > { %2143 = vmatmul.mubr.msk.f32.gmra.mrb[36].mxu1 %vm528_vm0, %v1060_v29 }
 0x26e   : > { %v2107_v40 = vpop.f32.mrb[22].mxu1 }
 0x26f   : > { %v1028_v42 = vadd.f32 %v2107_v40, %v1766_v5  ;;  %v1022_v43 = vpop.f32.mrb[23].mxu1 }
 0x270   : > { %v1023_v44 = vadd.f32 %v1766_v5, %v1022_v43 }
 0x271   : > { %v1062_v47 = vmax.f32 %v1028_v42, 0.0 }
 0x272   : > { %v1061_v46 = vmax.f32 %v1023_v44, 0.0 }
 0x274   : > { %2145 = vmatprep.mubr.msk.f32.mxu1 %vm528_vm0, %v1061_v46 }
 0x275   : > { %2146 = vmatmul.mubr.msk.f32.gmra.mrb[38].mxu1 %vm528_vm0, %v1062_v47 }
 0x276   : > { %v2110_v25 = vpop.f32.mrb[24].mxu1 }
 0x277   : > { %v1038_v48 = vadd.f32 %v2110_v25, %v1766_v5  ;;  %v1032_v50 = vpop.f32.mrb[25].mxu1  ;;  %v2566_v25 = vmov 0.0|0.0  }
 0x278   : > { %v1033_v51 = vadd.f32 %v1766_v5, %v1032_v50  ;;  %2325 = vmatprep.subr.bf16.mxu1 %v2566_v25  ;;  %v1635_v50 = vld [vmem:[#allocation2] sm:$0x1] }
 0x279   : > { %v1064_v37 = vmax.f32 %v1038_v48, 0.0  ;;  %v2568_v48 = vmov 0.0  }
 0x27a   : > { %v1063_v52 = vmax.f32 %v1033_v51, 0.0  ;;  %v2569_v51 = vmov 0  }
 0x27b   : > { %2433 = vset.pattern.permute.xlu0 %v2569_v51 }
 0x27c   : > { %2148 = vmatprep.mubr.msk.f32.mxu1 %vm528_vm0, %v1063_v52  ;;  %1638 = vperm.xlu0 %2433, %v1635_v50   ;;  %v3143_v52 = vld [vmem:[%s3250_s8] ss:$0 sm:$0xff] }
 0x27d   : > { %2149 = vmatmul.mubr.msk.f32.gmra.mrb[40].mxu1 %vm528_vm0, %v1064_v37 }
 0x27e   : > { %v2113_v54 = vpop.f32.mrb[26].mxu1 }
 0x27f   : > { %v1048_v55 = vadd.f32 %v2113_v54, %v1766_v5  ;;  %v1042_v56 = vpop.f32.mrb[27].mxu1 }
 0x280   : > { %v1043_v57 = vadd.f32 %v1766_v5, %v1042_v56 }
 0x281   : > { %v1066_v59 = vmax.f32 %v1048_v55, 0.0 }
 0x282   : > { %v1065_v58 = vmax.f32 %v1043_v57, 0.0 }
 0x284   : > { %2151 = vmatprep.mubr.msk.f32.mxu1 %vm528_vm0, %v1065_v58 }
 0x285   : > { %2152 = vmatmul.mubr.msk.f32.gmra.mrb[42].mxu1 %vm528_vm0, %v1066_v59 }
 0x286   : > { %2218 = vmatprep.mubr.msk.f32.mxu1 %vm2567_vm2, %v2568_v48 }
 0x320   : > { %v2132_v63 = vpop.f32.mrb[28].mxu1 }
 0x321   : > { %v1202_v45 = vadd.f32 %v2132_v63, %v1767_v62  ;;  %v1196_v0 = vpop.f32.mrb[29].mxu1 }
 0x322   : > { %v1197_v1 = vadd.f32 %v1767_v62, %v1196_v0 }
 0x323   : > { %v1276_v41 = vmax.f32 %v1202_v45, 0.0 }
 0x324   : > { %v1275_v2 = vmax.f32 %v1197_v1, 0.0 }
 0x326   : > { %2162 = vmatprep.mubr.msk.f32.mxu0 %vm1302_vm1, %v1275_v2 }
 0x327   : > { %2163 = vmatmul.mubr.msk.f32.vlgmr.msra.gmra.mrb[36].mxu0 %vm1302_vm1, %v1276_v41 }
 0x328   : > { %v2135_v3 = vpop.f32.mrb[30].mxu1 }
 0x329   : > { %v1212_v4 = vadd.f32 %v2135_v3, %v1767_v62  ;;  %v1206_v16 = vpop.f32.mrb[31].mxu1 }
 0x32a   : > { %v1207_v49 = vadd.f32 %v1767_v62, %v1206_v16 }
 0x32b   : > { %v1278_v5 = vmax.f32 %v1212_v4, 0.0 }
 0x32c   : > { %v1277_v53 = vmax.f32 %v1207_v49, 0.0 }
 0x32e   : > { %2165 = vmatprep.mubr.msk.f32.mxu0 %vm1302_vm1, %v1277_v53 }
 0x32f   : > { %2166 = vmatmul.mubr.msk.f32.gmra.mrb[38].mxu0 %vm1302_vm1, %v1278_v5 }
 0x330   : > { %v2138_v6 = vpop.f32.mrb[32].mxu1 }
 0x331   : > { %v1222_v8 = vadd.f32 %v2138_v6, %v1767_v62  ;;  %v1216_v9 = vpop.f32.mrb[33].mxu1 }
 0x332   : > { %v1217_v10 = vadd.f32 %v1767_v62, %v1216_v9 }
 0x333   : > { %v1280_v12 = vmax.f32 %v1222_v8, 0.0 }
 0x334   : > { %v1279_v11 = vmax.f32 %v1217_v10, 0.0 }
 0x336   : > { %2168 = vmatprep.mubr.msk.f32.mxu0 %vm1302_vm1, %v1279_v11 }
 0x337   : > { %2169 = vmatmul.mubr.msk.f32.gmra.mrb[40].mxu0 %vm1302_vm1, %v1280_v12 }
 0x338   : > { %v2141_v13 = vpop.f32.mrb[34].mxu1 }
 0x339   : > { %v1232_v14 = vadd.f32 %v2141_v13, %v1767_v62  ;;  %v1226_v15 = vpop.f32.mrb[35].mxu1 }
 0x33a   : > { %v1227_v17 = vadd.f32 %v1767_v62, %v1226_v15 }
 0x33b   : > { %v1282_v20 = vmax.f32 %v1232_v14, 0.0 }
 0x33c   : > { %v1281_v19 = vmax.f32 %v1227_v17, 0.0 }
 0x33e   : > { %2171 = vmatprep.mubr.msk.f32.mxu0 %vm1302_vm1, %v1281_v19 }
 0x33f   : > { %2172 = vmatmul.mubr.msk.f32.gmra.mrb[42].mxu0 %vm1302_vm1, %v1282_v20 }
 0x340   : > { %v2144_v22 = vpop.f32.mrb[36].mxu1 }
 0x341   : > { %v1242_v23 = vadd.f32 %v2144_v22, %v1767_v62  ;;  %v1236_v21 = vpop.f32.mrb[37].mxu1 }
 0x342   : > { %v1237_v24 = vadd.f32 %v1767_v62, %v1236_v21 }
 0x343   : > { %v1284_v26 = vmax.f32 %v1242_v23, 0.0 }
 0x344   : > { %v1283_v7 = vmax.f32 %v1237_v24, 0.0 }
 0x346   : > { %2174 = vmatprep.mubr.msk.f32.mxu0 %vm1302_vm1, %v1283_v7 }
 0x347   : > { %2175 = vmatmul.mubr.msk.f32.gmra.mrb[44].mxu0 %vm1302_vm1, %v1284_v26 }
 0x348   : > { %v2147_v27 = vpop.f32.mrb[38].mxu1 }
 0x349   : > { %v1252_v28 = vadd.f32 %v2147_v27, %v1767_v62  ;;  %v1246_v30 = vpop.f32.mrb[39].mxu1 }
 0x34a   : > { %v1247_v31 = vadd.f32 %v1767_v62, %v1246_v30 }
 0x34b   : > { %v1286_v32 = vmax.f32 %v1252_v28, 0.0 }
 0x34c   : > { %v1285_v18 = vmax.f32 %v1247_v31, 0.0 }
 0x34e   : > { %2177 = vmatprep.mubr.msk.f32.mxu0 %vm1302_vm1, %v1285_v18 }
 0x34f   : > { %2178 = vmatmul.mubr.msk.f32.gmra.mrb[46].mxu0 %vm1302_vm1, %v1286_v32 }
 0x350   : > { %v2150_v34 = vpop.f32.mrb[40].mxu1 }
 0x351   : > { %v1262_v35 = vadd.f32 %v2150_v34, %v1767_v62  ;;  %v1256_v36 = vpop.f32.mrb[41].mxu1 }
 0x352   : > { %v1257_v38 = vadd.f32 %v1767_v62, %v1256_v36 }
 0x353   : > { %v1288_v29 = vmax.f32 %v1262_v35, 0.0 }
 0x354   : > { %v1287_v39 = vmax.f32 %v1257_v38, 0.0 }
 0x356   : > { %2180 = vmatprep.mubr.msk.f32.mxu0 %vm1302_vm1, %v1287_v39 }
 0x357   : > { %2181 = vmatmul.mubr.msk.f32.gmra.mrb[48].mxu0 %vm1302_vm1, %v1288_v29 }
 0x358   : > { %v2153_v40 = vpop.f32.mrb[42].mxu1 }
 0x359   : > { %v1272_v42 = vadd.f32 %v2153_v40, %v1767_v62  ;;  %v1266_v43 = vpop.f32.mrb[43].mxu1 }
 0x35a   : > { %v1267_v44 = vadd.f32 %v1767_v62, %v1266_v43 }
 0x35b   : > { %v1290_v47 = vmax.f32 %v1272_v42, 0.0 }
 0x35c   : > { %v1289_v46 = vmax.f32 %v1267_v44, 0.0 }
 0x35e   : > { %2183 = vmatprep.mubr.msk.f32.mxu0 %vm1302_vm1, %v1289_v46  ;;  %v1512_v46 = vld [vmem:[%s3251_s9] sm:$0xff] }
 0x35f   : > { %2184 = vmatmul.mubr.msk.f32.gmra.mrb[50].mxu0 %vm1302_vm1, %v1290_v47  ;;  %v1641_v47 = vlaneseq }
 0x361   : > { %v1642_v48 = vshrl.u32 %v1641_v47, 7 }
 0x363   : > { %v1643_v50 = vsub.s32 0, %v1642_v48 }
 0x3fa   : > { %v2164_v37 = vpop.f32.mrb[36].mxu0 }
 0x3fb   : > { %v1423_v54 = vadd.f32 %v2164_v37, %v3143_v52  ;;  %v1417_v55 = vpop.f32.mrb[37].mxu0 }
 0x3fc   : > { %v1418_v56 = vadd.f32 %v3143_v52, %v1417_v55 }
 0x3fd   : > { %v1497_v57 = vmax.f32 %v1423_v54, 0.0 }
 0x3fe   : > { %v1496_v58 = vmax.f32 %v1418_v56, 0.0 }
 0x400   : > { %v2326_v33 = vpack.c.bf16 %v1497_v57, %v1496_v58 }
 0x402   : > { %v2167_v60 = vpop.f32.mrb[38].mxu0  ;;  %2328 = vmatpush3.bf16.xpose.msk.msra.mxu1 %vm3149_vm4, %v2326_v33 }
 0x403   : > { %v1433_v61 = vadd.f32 %v2167_v60, %v3143_v52  ;;  %v1427_v62 = vpop.f32.mrb[39].mxu0  ;;  %2329 = vmatprep.subr.bf16.mxu1 %v2566_v25 }
 0x404   : > { %v1428_v63 = vadd.f32 %v3143_v52, %v1427_v62 }
 0x405   : > { %v1499_v45 = vmax.f32 %v1433_v61, 0.0 }
 0x406   : > { %v1498_v0 = vmax.f32 %v1428_v63, 0.0 }
 0x408   : > { %v2330_v1 = vpack.c.bf16 %v1499_v45, %v1498_v0 }
 0x40a   : > { %v2170_v2 = vpop.f32.mrb[40].mxu0  ;;  %2332 = vmatpush3.bf16.xpose.msk.msra.mxu1 %vm3149_vm4, %v2330_v1 }
 0x40b   : > { %v1443_v41 = vadd.f32 %v2170_v2, %v3143_v52  ;;  %v1437_v3 = vpop.f32.mrb[41].mxu0  ;;  %2333 = vmatprep.subr.bf16.mxu1 %v2566_v25 }
 0x40c   : > { %v1438_v4 = vadd.f32 %v3143_v52, %v1437_v3 }
 0x40d   : > { %v1501_v16 = vmax.f32 %v1443_v41, 0.0 }
 0x40e   : > { %v1500_v49 = vmax.f32 %v1438_v4, 0.0 }
 0x410   : > { %v2334_v53 = vpack.c.bf16 %v1501_v16, %v1500_v49 }
 0x412   : > { %v2173_v5 = vpop.f32.mrb[42].mxu0  ;;  %2336 = vmatpush3.bf16.xpose.msk.msra.mxu1 %vm3149_vm4, %v2334_v53 }
 0x413   : > { %v1453_v6 = vadd.f32 %v2173_v5, %v3143_v52  ;;  %v1447_v8 = vpop.f32.mrb[43].mxu0  ;;  %2337 = vmatprep.subr.bf16.mxu1 %v2566_v25 }
 0x414   : > { %v1448_v9 = vadd.f32 %v3143_v52, %v1447_v8 }
 0x415   : > { %v1503_v10 = vmax.f32 %v1453_v6, 0.0 }
 0x416   : > { %v1502_v11 = vmax.f32 %v1448_v9, 0.0 }
 0x418   : > { %v2338_v12 = vpack.c.bf16 %v1503_v10, %v1502_v11 }
 0x41a   : > { %v2176_v13 = vpop.f32.mrb[44].mxu0  ;;  %2340 = vmatpush3.bf16.xpose.msk.msra.mxu1 %vm3149_vm4, %v2338_v12 }
 0x41b   : > { %v1463_v14 = vadd.f32 %v2176_v13, %v3143_v52  ;;  %v1457_v15 = vpop.f32.mrb[45].mxu0  ;;  %2341 = vmatprep.subr.bf16.mxu1 %v2566_v25 }
 0x41c   : > { %v1458_v17 = vadd.f32 %v3143_v52, %v1457_v15 }
 0x41d   : > { %v1505_v19 = vmax.f32 %v1463_v14, 0.0 }
 0x41e   : > { %v1504_v20 = vmax.f32 %v1458_v17, 0.0 }
 0x420   : > { %v2342_v22 = vpack.c.bf16 %v1505_v19, %v1504_v20 }
 0x422   : > { %v2179_v23 = vpop.f32.mrb[46].mxu0  ;;  %2344 = vmatpush3.bf16.xpose.msk.msra.mxu1 %vm3149_vm4, %v2342_v22 }
 0x423   : > { %v1473_v21 = vadd.f32 %v2179_v23, %v3143_v52  ;;  %v1467_v24 = vpop.f32.mrb[47].mxu0  ;;  %2345 = vmatprep.subr.bf16.mxu1 %v2566_v25 }
 0x424   : > { %v1468_v7 = vadd.f32 %v3143_v52, %v1467_v24 }
 0x425   : > { %v1507_v26 = vmax.f32 %v1473_v21, 0.0 }
 0x426   : > { %v1506_v27 = vmax.f32 %v1468_v7, 0.0 }
 0x428   : > { %v2346_v28 = vpack.c.bf16 %v1507_v26, %v1506_v27 }
 0x42a   : > { %v2182_v30 = vpop.f32.mrb[48].mxu0  ;;  %2348 = vmatpush3.bf16.xpose.msk.msra.mxu1 %vm3149_vm4, %v2346_v28 }
 0x42b   : > { %v1483_v31 = vadd.f32 %v2182_v30, %v3143_v52  ;;  %v1477_v18 = vpop.f32.mrb[49].mxu0  ;;  %2349 = vmatprep.subr.bf16.mxu1 %v2566_v25 }
 0x42c   : > { %v1478_v32 = vadd.f32 %v3143_v52, %v1477_v18 }
 0x42d   : > { %v1509_v34 = vmax.f32 %v1483_v31, 0.0 }
 0x42e   : > { %v1508_v35 = vmax.f32 %v1478_v32, 0.0 }
 0x430   : > { %v2350_v36 = vpack.c.bf16 %v1509_v34, %v1508_v35 }
 0x432   : > { %v2185_v38 = vpop.f32.mrb[50].mxu0  ;;  %2352 = vmatpush3.bf16.xpose.msk.msra.mxu1 %vm3149_vm4, %v2350_v36 }
 0x433   : > { %v1493_v39 = vadd.f32 %v2185_v38, %v3143_v52  ;;  %v1487_v29 = vpop.f32.mrb[51].mxu0  ;;  %2353 = vmatprep.subr.bf16.mxu1 %v2566_v25  ;;  %v1639_v25 = vpop.permute.xlu0 %1638 }
 0x434   : > { %v1488_v40 = vadd.f32 %v3143_v52, %v1487_v29  ;;  %v1644_v51 = vrot.slane %v1639_v25, %v1643_v50 }
 0x435   : > { %v1511_v42 = vmax.f32 %v1493_v39, 0.0 }
 0x436   : > { %v1510_v43 = vmax.f32 %v1488_v40, 0.0 }
 0x438   : > { %v2354_v44 = vpack.c.bf16 %v1511_v42, %v1510_v43 }
 0x43a   : > { %2356 = vmatpush3.bf16.xpose.msk.msra.mxu1 %vm3149_vm4, %v2354_v44 }
 0x441   : > { %2219 = vmatmul.mubr.msk.f32.vlgmr.msra.gmra.mrb[44].mxu1 %vm1513_vm3, %v1512_v46 }
 0x514   : > { %v1631_v52 = vpop.f32.mrb[44].mxu1 }
 0x515   : > { %v1645_v37 = vadd.f32 %v1644_v51, %v1631_v52  ;;  %v2220_v54 = vpop.f32.mrb[45].mxu1 }
 0x517   : > { %1646 = vst [vmem:[%s426_s15] sm:$0x1] %v1645_v37 }
 0x518   : > { %2503 = shalt.err (!%p2500_p6)
}
 0x519   : > { %s2504_s26 = scalar_lea.hbm %s3199_s17, 16  ;;  %s2508_s24 = scalar_lea.hbm %s3253_s11, 48 }
 0x51a   : > { %p2505_p11 = scmp.ne.s32.totalorder %s3199_s17, %s2504_s26  ;;  %p2509_p2 = scmp.lt.u32.totalorder %s3199_s17, %s3253_s11 }
 0x51b   : > { %p2510_p5 = scmp.lt.u32.totalorder %s2508_s24, %s2504_s26  ;;  %p2512_p8 = scmp.lt.u32.totalorder %s2504_s26, %s3199_s17 }
 0x51c   : > { %p2506_p13 = pnand %p2505_p11, %p3279_p9 }
 0x51d   : > { %p2511_p3 = por %p2510_p5, %p2509_p2 }
 0x51e   : > { %p2507_p12 = pneg %p2506_p13 }
 0x51f   : > { %p2513_p10 = por %p2512_p8, %p2511_p3 }
 0x521   : > { %p2514_p1 = pnand %p2513_p10, %p2507_p12 }
 0x523   : > { %2517 = shalt.err (!%p2514_p1)
}
 0x524   : > { %2381 = dma.vmem_to_hbm [thread:$0]  (%p3279_p9), %s3201_s6, 16, %s3199_s17, %s1648_s18  }
 0x525 PF: > { %p2393_p0 = scmp.ge.s32.totalorder %s2560_s22, 2  ;;  %s1672_s15 = sand.u32 1, %s2548_s19  }
 0x526   : > { %p3280_p7 = scmp.ne.s32.totalorder %s3268_s12, 0  ;;  %s1673_s13 = scalar_lea.sflag [#allocation5], %s1672_s15 }
 0x528   : > { %p2388_p4 = pnand %p2393_p0, %p3280_p7 }
 0x52a   : > { %2543 = dma.done.wait (!%p2388_p4), %s1673_s13, 16  }
 0x52b   : > { %2545 = vsyncadd (!%p2388_p4), %s1673_s13, 4294967280  ;;  %s3281_s22 = sld [smem:[#allocation13_spill]]  ;;  %s3282_s14 = sld [smem:[#allocation12_spill]] }
 0x52c   : > { %s3283_s21 = sld [smem:[#allocation14_spill]]  ;;  %s3284_s19 = smov %s2552_s20 }
 0x531   : > { %p27_p6 = scmp.ge.s32.totalorder %s3281_s22, 5   ;;  %s3285_s20 = smov %s3282_s14 }
 0x533   :  { %29 = sbr.rel (!%p27_p6) target bundleno = 9 (0x9), region = 113 }
 0x53a   :  { %1677 = vsyncpa [#allocation4], 1 }
 0x53b   :  { %1679 = vsyncpa [#allocation4 + $0x1], 1 }
 0x53c   :  { %1680 = vsyncpa [#allocation7], 1 }
 0x53d   :  { %1681 = vsyncpa [#allocation5], 1 }
 0x53e   :  { %1683 = vsyncpa [#allocation5 + $0x1], 1 }

</bundles_post_ra>
